<compile_context>
chip_gen: v5e
topology: v5e:2x2
jax: 0.10.0
libtpu: 0.0.40
codegen_flags: <defaults>
</compile_context>

<pallas_src>
import math
import functools

import jax
import jax.numpy as jnp
from jax.experimental import pallas as pl
from jax.experimental.pallas import tpu as pltpu


# ----------------------------- in-kernel helpers -----------------------------

def _gelu_tanh(x):
    # GELU with tanh approximation (matches nn.GELU(approximate='tanh'))
    c = math.sqrt(2.0 / math.pi)
    return 0.5 * x * (1.0 + jnp.tanh(c * (x + 0.044715 * x * x * x)))


def _layernorm(x, w, b, eps=1e-5):
    mu = jnp.mean(x, axis=-1, keepdims=True)
    var = jnp.mean((x - mu) ** 2, axis=-1, keepdims=True)
    return (x - mu) * jax.lax.rsqrt(var + eps) * w + b


# ------------------------- kernel 1: LN1 + QKV matmul -------------------------

def ln_qkv_kernel(x_ref, ln1w_ref, ln1b_ref, wqkv_ref, bqkv_ref, qkv_ref):
    x = x_ref[0].astype(jnp.float32)                     # (Tt, C)
    h = _layernorm(x, ln1w_ref[...], ln1b_ref[...])
    qkv = jnp.dot(h.astype(wqkv_ref.dtype), wqkv_ref[...],
                  preferred_element_type=jnp.float32) + bqkv_ref[...]
    qkv_ref[0] = qkv.astype(qkv_ref.dtype)               # (Tt, 3C) bf16, lane-dense


# ------------- kernel 2: flash attention + proj + residuals + MLP -------------

def attn_mlp_kernel(x_ref, q_ref, k_ref, v_ref,
                    wpo_ref, bpo_ref, ln2w_ref, ln2b_ref,
                    wfc_ref, bfc_ref, wp2_ref, bp2_ref,
                    o_ref,
                    m_scr, l_scr, acc_scr,
                    *, block_q, block_k):
    qi = pl.program_id(1)
    ki = pl.program_id(2)
    n_kv = pl.num_programs(2)

    @pl.when(ki == 0)
    def _init():
        m_scr[...] = jnp.full_like(m_scr, -1e30)
        l_scr[...] = jnp.zeros_like(l_scr)
        acc_scr[...] = jnp.zeros_like(acc_scr)

    # Skip kv blocks that lie entirely in the causally-masked future region.
    @pl.when(ki * block_k <= qi * block_q + (block_q - 1))
    def _compute():
        q = q_ref[0]                                     # (H, Tq, hd) bf16 (pre-scaled)
        k = k_ref[0]                                     # (H, Tk, hd) bf16
        v = v_ref[0]                                     # (H, Tk, hd) bf16

        # Batched over heads; contract head_dim directly (no k transpose).
        s = jax.lax.dot_general(
            q, k, (((2,), (2,)), ((0,), (0,))),
            preferred_element_type=jnp.float32)          # (H, Tq, Tk)

        row = qi * block_q + jax.lax.broadcasted_iota(jnp.int32, (block_q, block_k), 0)
        col = ki * block_k + jax.lax.broadcasted_iota(jnp.int32, (block_q, block_k), 1)
        s = jnp.where((row >= col)[None, :, :], s, -1e30)

        m_prev = m_scr[...]
        m_new = jnp.maximum(m_prev, s.max(axis=-1, keepdims=True))
        alpha = jnp.exp(m_prev - m_new)
        p = jnp.exp(s - m_new)
        l_scr[...] = alpha * l_scr[...] + p.sum(axis=-1, keepdims=True)
        pv = jax.lax.dot_general(
            p.astype(v.dtype), v, (((2,), (1,)), ((0,), (0,))),
            preferred_element_type=jnp.float32)          # (H, Tq, hd)
        acc_scr[...] = alpha * acc_scr[...] + pv
        m_scr[...] = m_new

    @pl.when(ki == n_kv - 1)
    def _finalize():
        # Normalize once on the (H, Tq, hd) accumulator (EUP approx reciprocal).
        inv_l = pl.reciprocal(l_scr[...], approx=True)
        y = (acc_scr[...] * inv_l).astype(wpo_ref.dtype)          # (H, Tq, hd)

        # Output projection: batched per-head matmul + head-sum (no transpose,
        # no lane-offset scatter).
        att = jax.lax.dot_general(
            y, wpo_ref[...], (((2,), (1,)), ((0,), (0,))),
            preferred_element_type=jnp.float32)                   # (H, Tq, C)
        att = jnp.sum(att, axis=0) + bpo_ref[...]                 # (Tq, C)

        x = x_ref[0].astype(jnp.float32)                          # (Tq, C)
        x1 = x + att                                              # residual 1

        # MLP branch (per q-block, so the (Tq, 4C) intermediate stays small).
        h2 = _layernorm(x1, ln2w_ref[...], ln2b_ref[...])
        f = jnp.dot(h2.astype(wfc_ref.dtype), wfc_ref[...],
                    preferred_element_type=jnp.float32) + bfc_ref[...]
        f = _gelu_tanh(f)
        mlp = jnp.dot(f.astype(wp2_ref.dtype), wp2_ref[...],
                      preferred_element_type=jnp.float32) + bp2_ref[...]

        o_ref[0] = (x1 + mlp).astype(o_ref.dtype)                 # residual 2


# ----------------------------------- wrapper ----------------------------------

def _resident(shape):
    """BlockSpec for a weight that stays fully resident in VMEM."""
    zeros = (0,) * len(shape)
    return pl.BlockSpec(shape, lambda *args: zeros)


def block_forward(x, params, n_head, block_q=None, block_k=None):
    B, T, C = x.shape
    assert C % n_head == 0
    hd = C // n_head
    if block_q is None:
        block_q = min(T, 256)   # 256-row tiles fill the v6e/v7x 256x256 MXU
    if block_k is None:
        block_k = min(T, 256)
    assert T % block_q == 0 and T % block_k == 0
    assert block_q % 8 == 0 or block_q == T
    f32, bf16 = jnp.float32, jnp.bfloat16

    # ---- one-time parameter preprocessing (plain XLA) ----
    ln1_w = params["ln1_w"].reshape(1, C).astype(f32)
    ln1_b = params["ln1_b"].reshape(1, C).astype(f32)
    ln2_w = params["ln2_w"].reshape(1, C).astype(f32)
    ln2_b = params["ln2_b"].reshape(1, C).astype(f32)

    scale = 1.0 / math.sqrt(hd)
    w_qkv = params["w_qkv"].astype(f32)
    w_qkv = w_qkv.at[:, :C].multiply(scale).astype(bf16)          # fold attn scale into Q
    b_qkv = params["b_qkv"].reshape(1, 3 * C).astype(f32)
    b_qkv = b_qkv.at[:, :C].multiply(scale)

    w_proj_r = params["w_proj"].astype(bf16).reshape(n_head, hd, C)
    b_proj = params["b_proj"].reshape(1, C).astype(f32)
    w_fc = params["w_fc"].astype(bf16)
    b_fc = params["b_fc"].reshape(1, 4 * C).astype(f32)
    w_proj2 = params["w_proj2"].astype(bf16)
    b_proj2 = params["b_proj2"].reshape(1, C).astype(f32)

    vmem_limit = 64 * 1024 * 1024

    # ---- kernel 1: LN1 + QKV ----
    n_t = T // block_q
    qkv = pl.pallas_call(
        ln_qkv_kernel,
        out_shape=jax.ShapeDtypeStruct((B, T, 3 * C), bf16),
        grid_spec=pltpu.PrefetchScalarGridSpec(
            num_scalar_prefetch=0,
            grid=(B, n_t),
            in_specs=[
                pl.BlockSpec((1, block_q, C), lambda b, t: (b, t, 0)),
                _resident((1, C)), _resident((1, C)),
                _resident((C, 3 * C)), _resident((1, 3 * C)),
            ],
            out_specs=pl.BlockSpec((1, block_q, 3 * C), lambda b, t: (b, t, 0)),
        ),
        compiler_params=pltpu.CompilerParams(
            dimension_semantics=("parallel", "parallel"),
            vmem_limit_bytes=vmem_limit),
        cost_estimate=pl.CostEstimate(
            flops=2 * B * T * C * 3 * C,
            transcendentals=B * T,
            bytes_accessed=4 * B * T * C + 2 * C * 3 * C + 2 * B * T * 3 * C),
    )(x, ln1_w, ln1_b, w_qkv, b_qkv)

    # Layout plumbing in XLA: (B, T, 3C) -> 3 x (B, n_head, T, hd)
    qkv_h = qkv.reshape(B, T, 3, n_head, hd).transpose(2, 0, 3, 1, 4)
    q, k, v = qkv_h[0], qkv_h[1], qkv_h[2]

    # ---- kernel 2: flash attention + proj + residuals + MLP ----
    n_q = T // block_q
    n_kv = T // block_k
    kernel = functools.partial(attn_mlp_kernel, block_q=block_q, block_k=block_k)
    flops2 = 4 * B * T * T * C + 18 * B * T * C * C
    bytes2 = 8 * B * T * C + 3 * 2 * B * T * C + 2 * (9 * C * C)

    out = pl.pallas_call(
        kernel,
        out_shape=jax.ShapeDtypeStruct((B, T, C), x.dtype),
        grid_spec=pltpu.PrefetchScalarGridSpec(
            num_scalar_prefetch=0,
            grid=(B, n_q, n_kv),
            in_specs=[
                pl.BlockSpec((1, block_q, C), lambda b, qi, ki: (b, qi, 0)),            # x
                pl.BlockSpec((1, n_head, block_q, hd), lambda b, qi, ki: (b, 0, qi, 0)),  # q
                pl.BlockSpec((1, n_head, block_k, hd), lambda b, qi, ki: (b, 0, ki, 0)),  # k
                pl.BlockSpec((1, n_head, block_k, hd), lambda b, qi, ki: (b, 0, ki, 0)),  # v
                _resident((n_head, hd, C)),   # w_proj (head-batched)
                _resident((1, C)),            # b_proj
                _resident((1, C)),            # ln2_w
                _resident((1, C)),            # ln2_b
                _resident((C, 4 * C)),        # w_fc
                _resident((1, 4 * C)),        # b_fc
                _resident((4 * C, C)),        # w_proj2
                _resident((1, C)),            # b_proj2
            ],
            out_specs=pl.BlockSpec((1, block_q, C), lambda b, qi, ki: (b, qi, 0)),
            scratch_shapes=[
                pltpu.VMEM((n_head, block_q, 1), jnp.float32),    # m
                pltpu.VMEM((n_head, block_q, 1), jnp.float32),    # l
                pltpu.VMEM((n_head, block_q, hd), jnp.float32),   # acc
            ],
        ),
        compiler_params=pltpu.CompilerParams(
            dimension_semantics=("parallel", "parallel", "arbitrary"),
            vmem_limit_bytes=vmem_limit),
        cost_estimate=pl.CostEstimate(
            flops=flops2,
            transcendentals=B * n_head * T * T + 4 * B * T * C,
            bytes_accessed=bytes2),
    )(x, q, k, v, w_proj_r, b_proj, ln2_w, ln2_b, w_fc, b_fc, w_proj2, b_proj2)
    return out


# ------------------------- pure-JAX reference (sanity) -------------------------

def block_ref(x, params, n_head):
    B, T, C = x.shape
    hd = C // n_head

    def ln(v, w, b):
        mu = jnp.mean(v, axis=-1, keepdims=True)
        var = jnp.mean((v - mu) ** 2, axis=-1, keepdims=True)
        return (v - mu) * jax.lax.rsqrt(var + 1e-5) * w + b

    h = ln(x, params["ln1_w"], params["ln1_b"])
    qkv = h @ params["w_qkv"] + params["b_qkv"]
    q, k, v = qkv[..., :C], qkv[..., C:2 * C], qkv[..., 2 * C:]
    q = q.reshape(B, T, n_head, hd).transpose(0, 2, 1, 3)
    k = k.reshape(B, T, n_head, hd).transpose(0, 2, 1, 3)
    v = v.reshape(B, T, n_head, hd).transpose(0, 2, 1, 3)
    att = jnp.einsum("bhqd,bhkd->bhqk", q, k) / math.sqrt(hd)
    mask = jnp.tril(jnp.ones((T, T), dtype=bool))
    att = jnp.where(mask, att, -jnp.inf)
    att = jax.nn.softmax(att, axis=-1)
    y = jnp.einsum("bhqk,bhkd->bhqd", att, v).transpose(0, 2, 1, 3).reshape(B, T, C)
    y = y @ params["w_proj"] + params["b_proj"]
    x = x + y

    h2 = ln(x, params["ln2_w"], params["ln2_b"])
    f = h2 @ params["w_fc"] + params["b_fc"]
    c = math.sqrt(2.0 / math.pi)
    f = 0.5 * f * (1.0 + jnp.tanh(c * (f + 0.044715 * f ** 3)))
    m = f @ params["w_proj2"] + params["b_proj2"]
    return x + m


# ------------------------------------ main -------------------------------------

if __name__ == "__main__":
    # Small GPT config: n_embd=32, n_head=4, B=2, T=8
    B, T, C, n_head = 2, 8, 32, 4

    key = jax.random.PRNGKey(0)
    keys = jax.random.split(key, 14)

    x = jax.random.normal(keys[0], (B, T, C), dtype=jnp.float32)

    s = 0.02
    params = {
        "ln1_w": 1.0 + s * jax.random.normal(keys[1], (C,), jnp.float32),
        "ln1_b": s * jax.random.normal(keys[2], (C,), jnp.float32),
        "ln2_w": 1.0 + s * jax.random.normal(keys[3], (C,), jnp.float32),
        "ln2_b": s * jax.random.normal(keys[4], (C,), jnp.float32),
        # Linear weights pre-transposed to (in, out); biases 1-D (PyTorch layout).
        "w_qkv": s * jax.random.normal(keys[5], (C, 3 * C), jnp.float32),
        "b_qkv": s * jax.random.normal(keys[6], (3 * C,), jnp.float32),
        "w_proj": s * jax.random.normal(keys[7], (C, C), jnp.float32),
        "b_proj": s * jax.random.normal(keys[8], (C,), jnp.float32),
        "w_fc": s * jax.random.normal(keys[9], (C, 4 * C), jnp.float32),
        "b_fc": s * jax.random.normal(keys[10], (4 * C,), jnp.float32),
        "w_proj2": s * jax.random.normal(keys[11], (4 * C, C), jnp.float32),
        "b_proj2": s * jax.random.normal(keys[12], (C,), jnp.float32),
    }

    out = block_forward(x, params, n_head)
    out = jax.block_until_ready(out)

    ref = block_ref(x, params, n_head)
    assert out.shape == (B, T, C)
    # bf16 MXU operands + approx reciprocal => slightly looser tolerance vs fp32 ref.
    assert jnp.allclose(out, ref, atol=2e-2, rtol=2e-2), "mismatch vs reference"

    print("KERNEL_OK")
</pallas_src>

<mosaic_0001>
module attributes {stable_mosaic.version = 11 : i64} {
  func.func @ln_qkv_kernel(%arg0: i32, %arg1: i32, %arg2: memref<1x8x32xf32, #tpu.memory_space<vmem>>, %arg3: memref<1x32xf32, #tpu.memory_space<vmem>>, %arg4: memref<1x32xf32, #tpu.memory_space<vmem>>, %arg5: memref<32x96xbf16, #tpu.memory_space<vmem>>, %arg6: memref<1x96xf32, #tpu.memory_space<vmem>>, %arg7: memref<1x8x96xbf16, #tpu.memory_space<vmem>>) attributes {dimension_semantics = [#tpu.dimension_semantics<parallel>, #tpu.dimension_semantics<parallel>], iteration_bounds = array<i64: 2, 1>, scalar_prefetch = 0 : i64, scratch_operands = 0 : i64, tpu.core_type = #tpu.core_type<tc>, window_params = [{transform_indices = @transform_0, window_bounds = array<i64: 1, 8, 32>}, {pipeline_mode = #tpu.pipeline_mode<synchronous>, transform_indices = @transform_1, window_bounds = array<i64: 1, 32>}, {pipeline_mode = #tpu.pipeline_mode<synchronous>, transform_indices = @transform_2, window_bounds = array<i64: 1, 32>}, {pipeline_mode = #tpu.pipeline_mode<synchronous>, transform_indices = @transform_3, window_bounds = array<i64: 32, 96>}, {pipeline_mode = #tpu.pipeline_mode<synchronous>, transform_indices = @transform_4, window_bounds = array<i64: 1, 96>}, {transform_indices = @transform_5, window_bounds = array<i64: 1, 8, 96>}]} {
    %c0 = arith.constant 0 : index
    %c0_0 = arith.constant 0 : index
    %c0_1 = arith.constant 0 : index
    %0 = vector.load %arg2[%c0, %c0_0, %c0_1] : memref<1x8x32xf32, #tpu.memory_space<vmem>>, vector<1x8x32xf32>
    %1 = vector.shape_cast %0 : vector<1x8x32xf32> to vector<8x32xf32>
    %c0_2 = arith.constant 0 : index
    %c0_3 = arith.constant 0 : index
    %2 = vector.load %arg3[%c0_2, %c0_3] : memref<1x32xf32, #tpu.memory_space<vmem>>, vector<1x32xf32>
    %c0_4 = arith.constant 0 : index
    %c0_5 = arith.constant 0 : index
    %3 = vector.load %arg4[%c0_4, %c0_5] : memref<1x32xf32, #tpu.memory_space<vmem>>, vector<1x32xf32>
    %cst = arith.constant dense<0.000000e+00> : vector<8xf32>
    %4 = vector.multi_reduction <add>, %1, %cst [1] : vector<8x32xf32> to vector<8xf32>
    %5 = vector.shape_cast %4 : vector<8xf32> to vector<8x1xf32>
    %cst_6 = arith.constant 3.200000e+01 : f32
    %6 = vector.broadcast %cst_6 : f32 to vector<8x1xf32>
    %7 = arith.divf %5, %6 : vector<8x1xf32>
    %8 = vector.broadcast %7 : vector<8x1xf32> to vector<8x32xf32>
    %9 = arith.subf %1, %8 : vector<8x32xf32>
    %10 = arith.mulf %9, %9 : vector<8x32xf32>
    %cst_7 = arith.constant dense<0.000000e+00> : vector<8xf32>
    %11 = vector.multi_reduction <add>, %10, %cst_7 [1] : vector<8x32xf32> to vector<8xf32>
    %12 = vector.shape_cast %11 : vector<8xf32> to vector<8x1xf32>
    %cst_8 = arith.constant 3.200000e+01 : f32
    %13 = vector.broadcast %cst_8 : f32 to vector<8x1xf32>
    %14 = arith.divf %12, %13 : vector<8x1xf32>
    %15 = vector.broadcast %7 : vector<8x1xf32> to vector<8x32xf32>
    %16 = arith.subf %1, %15 : vector<8x32xf32>
    %cst_9 = arith.constant 9.99999974E-6 : f32
    %17 = vector.broadcast %cst_9 : f32 to vector<8x1xf32>
    %18 = arith.addf %14, %17 : vector<8x1xf32>
    %19 = math.rsqrt %18 : vector<8x1xf32>
    %20 = vector.broadcast %19 : vector<8x1xf32> to vector<8x32xf32>
    %21 = arith.mulf %16, %20 : vector<8x32xf32>
    %22 = vector.broadcast %2 : vector<1x32xf32> to vector<8x32xf32>
    %23 = arith.mulf %21, %22 : vector<8x32xf32>
    %24 = vector.broadcast %3 : vector<1x32xf32> to vector<8x32xf32>
    %25 = arith.addf %23, %24 : vector<8x32xf32>
    %26 = arith.truncf %25 : vector<8x32xf32> to vector<8x32xbf16>
    %c0_10 = arith.constant 0 : index
    %c0_11 = arith.constant 0 : index
    %27 = vector.load %arg5[%c0_10, %c0_11] : memref<32x96xbf16, #tpu.memory_space<vmem>>, vector<32x96xbf16>
    %cst_12 = arith.constant dense<0.000000e+00> : vector<8x96xf32>
    %28 = tpu.matmul %26, %27, %cst_12 {dimension_numbers = #tpu.dot_dimension_numbers<[1], [0], [0], [1], [0, 0, 1, 1], [], []>} : vector<8x32xbf16>, vector<32x96xbf16>, vector<8x96xf32> -> vector<8x96xf32>
    %c0_13 = arith.constant 0 : index
    %c0_14 = arith.constant 0 : index
    %29 = vector.load %arg6[%c0_13, %c0_14] : memref<1x96xf32, #tpu.memory_space<vmem>>, vector<1x96xf32>
    %30 = vector.broadcast %29 : vector<1x96xf32> to vector<8x96xf32>
    %31 = arith.addf %28, %30 : vector<8x96xf32>
    %32 = arith.truncf %31 : vector<8x96xf32> to vector<8x96xbf16>
    %c0_15 = arith.constant 0 : index
    %c0_16 = arith.constant 0 : index
    %c0_17 = arith.constant 0 : index
    %33 = vector.load %arg7[%c0_15, %c0_16, %c0_17] : memref<1x8x96xbf16, #tpu.memory_space<vmem>>, vector<1x8x96xbf16>
    %34 = vector.shape_cast %33 : vector<1x8x96xbf16> to vector<8x96xbf16>
    %35 = vector.shape_cast %32 : vector<8x96xbf16> to vector<1x8x96xbf16>
    tpu.vector_store %arg7[%c0_15, %c0_16, %c0_17], %35 {strides = array<i32>} : memref<1x8x96xbf16, #tpu.memory_space<vmem>>, vector<1x8x96xbf16>,
    return
  }
  func.func @transform_0(%arg0: i32, %arg1: i32) -> (i32, i32, i32) {
    %c0_i32 = arith.constant 0 : i32
    %c0_i32_0 = arith.constant 0 : i32
    return %arg0, %arg1, %c0_i32 : i32, i32, i32
  }
  func.func @transform_1(%arg0: i32, %arg1: i32) -> (i32, i32) {
    %c0_i32 = arith.constant 0 : i32
    %c0_i32_0 = arith.constant 0 : i32
    %c0_i32_1 = arith.constant 0 : i32
    return %c0_i32, %c0_i32_0 : i32, i32
  }
  func.func @transform_2(%arg0: i32, %arg1: i32) -> (i32, i32) {
    %c0_i32 = arith.constant 0 : i32
    %c0_i32_0 = arith.constant 0 : i32
    %c0_i32_1 = arith.constant 0 : i32
    return %c0_i32, %c0_i32_0 : i32, i32
  }
  func.func @transform_3(%arg0: i32, %arg1: i32) -> (i32, i32) {
    %c0_i32 = arith.constant 0 : i32
    %c0_i32_0 = arith.constant 0 : i32
    %c0_i32_1 = arith.constant 0 : i32
    return %c0_i32, %c0_i32_0 : i32, i32
  }
  func.func @transform_4(%arg0: i32, %arg1: i32) -> (i32, i32) {
    %c0_i32 = arith.constant 0 : i32
    %c0_i32_0 = arith.constant 0 : i32
    %c0_i32_1 = arith.constant 0 : i32
    return %c0_i32, %c0_i32_0 : i32, i32
  }
  func.func @transform_5(%arg0: i32, %arg1: i32) -> (i32, i32, i32) {
    %c0_i32 = arith.constant 0 : i32
    %c0_i32_0 = arith.constant 0 : i32
    return %arg0, %arg1, %c0_i32 : i32, i32, i32
  }
}

</mosaic_0001>

<bundles_post_ra>
// kernel: tpu_custom_call.1
= control target key start
LH: loop header
LB: loop body
LE: loop exit
PB: predicated region body
PF: predicated region fallthrough
CT: control target
= control target key end

     0   :  { %10 = vsyncpa [#allocation3], 0  ;;  %s978_s0 = inlined_call_operand.hbm [shape: f32[2,8,32], index: 0, kind: input, shape index: {}]   ;;  %s979_s1 = inlined_call_operand.hbm [shape: f32[1,32], index: 1, kind: input, shape index: {}]   ;;  %s980_s2 = inlined_call_operand.vmem [shape: f32[1,32], index: 2, kind: input, shape index: {}]   ;;  %s981_s3 = inlined_call_operand.hbm [shape: bf16[32,96], index: 3, kind: input, shape index: {}]   ;;  %s982_s4 = inlined_call_operand.vmem [shape: f32[1,96], index: 4, kind: input, shape index: {}]   ;;  %s983_s5 = inlined_call_operand.hbm [shape: bf16[2,8,96], index: 5, kind: output, shape index: {}]  }
   0x1   :  { %12 = vsyncpa [#allocation3 + $0x1], 0 }
   0x2   :  { %13 = vsyncpa [#allocation6], 0 }
   0x3   :  { %14 = vsyncpa [#allocation4], 0 }
   0x4   :  { %16 = vsyncpa [#allocation4 + $0x1], 0  ;;  %s822_s18 = smov 0   ;;  %s824_s19 = smov 0  }
   0x5   :  { %s826_s20 = smov 0   ;;  %s828_s21 = smov 0  }
   0x6   :  { %s830_s22 = smov 0   ;;  %s832_s23 = smov 0  }
   0x7 LB: > { %s488_s24 = sadd.s32 4294967295, %s785_s23   ;;  %s489_s25 = sadd.s32 4294967294, %s785_s23   ;;  %s785_s23 = sphi %s832_s23, %s22_s23   ;;  %s781_s22 = sphi %s830_s22, %s993_s22   ;;  %s777_s21 = sphi %s828_s21, %s992_s21   ;;  %s773_s20 = sphi %s826_s20, %s991_s20   ;;  %s769_s19 = sphi %s824_s19, %s990_s19   ;;  %s765_s18 = sphi %s822_s18, %s989_s18  }
   0x8   : > { %p56_p0 = scmp.ne.s32.totalorder %s769_s19, %s765_s18  ;;  %p858_p1 = scmp.eq.s32.totalorder %s488_s24, 0 }
   0x9   : > { %p172_p2 = scmp.eq.s32.totalorder %s489_s25, 1  ;;  %p490_p4 = scmp.ge.s32.totalorder %s785_s23, 1 }
   0xa   : > { %p864_p3 = por %p858_p1, %p56_p0  ;;  %p179_p6 = scmp.lt.s32.totalorder %s785_s23, 3 }
   0xb   : > { %p869_p5 = por %p172_p2, %p56_p0  ;;  %s191_s6 = sshll.u32 %s979_s1, 4  ;;  %s192_s6 = int_to_ptr.hbm [resolvable:$true] %s191_s6 }
   0xc   : > { %p877_p7 = pnand %p490_p4, %p179_p6  ;;  %p493_p8 = scmp.ge.s32.totalorder %s785_s23, 2 }
   0xd   : > { %s787_s8 = smov [#allocation5]   ;;  %s205_s12 = sshll.u32 %s981_s3, 4  ;;  %s206_s12 = int_to_ptr.hbm [resolvable:$true] %s205_s12 }
   0xe   : > { %p528_p9 = pneg %p877_p7  ;;  %s193_s9 = sshll.u32 %s787_s8, 4  ;;  %s194_s9 = int_to_ptr.vmem [resolvable:$true] %s193_s9 }
   0xf   : > { %s788_s13 = smov [#allocation7]   ;;  %s789_s15 = smov 64  }
  0x10   : > { %p529_p10 = pnand %p528_p9, %p858_p1  ;;  %s207_s14 = sshll.u32 %s788_s13, 4  ;;  %s208_s14 = int_to_ptr.vmem [resolvable:$true] %s207_s14 }
  0x11   : > { %s790_s16 = smov 4   ;;  %p166_p11 = scmp.eq.s32.totalorder %s488_s24, 1 }
  0x12   : > { %531 = dma.hbm_to_vmem [thread:$0]  (!%p529_p10), %s192_s6, 16, %s194_s9, [#allocation6]  }
  0x13   : > { %534 = dma.hbm_to_vmem [thread:$0]  (!%p529_p10), %s206_s12, 256, %s208_s14, [#allocation6], %s789_s15, %s789_s15, %s790_s16  }
  0x14   : > { %s34_s17 = sadd.s32 1, %s781_s22  ;;  %s43_s25 = sadd.s32 1, %s773_s20 }
  0x15   : > { %p36_p12 = scmp.ge.s32.totalorder %s34_s17, 2  ;;  %p50_p13 = scmp.ne.s32.totalorder %s773_s20, %s769_s19 }
  0x16   : > { %p51_p0 = scmp.eq.s32.totalorder %s785_s23, 0  ;;  %p545_p4 = scmp.lt.s32.totalorder %s785_s23, 2 }
  0x17   : > { %s995_s17 = smov (%p36_p12, %s34_s17), 0  ;;  %p898_p2 = por %p166_p11, %p50_p13 }
  0x18   : > { %s38_s30 = ssub.s32 %s781_s22, %s995_s17  ;;  %s224_s6 = sand.u32 1, %s773_s20  }
  0x19   : > { %p41_p6 = scmp.eq.s32.totalorder %s38_s30, 0  ;;  %p52_p9 = por %p51_p0, %p50_p13 }
  0x1a   : > { %s494_s8 = sshll.u32 %s224_s6, 3  ;;  %s495_s24 = sshll.u32 %s781_s22, 3 }
  0x1b   : > { %s908_s9 = scalar_select %p41_p6, %s773_s20, %s43_s25  }
  0x1c   : > { %s233_s12 = scalar_lea.hbm %s978_s0, %s495_s24  ;;  %s228_s14 = scalar_lea.vmem [#allocation2], %s494_s8 }
  0x1d   : > { %s235_s13 = sshll.u32 %s233_s12, 4  ;;  %s237_s15 = sshll.u32 %s228_s14, 4  ;;  %s236_s13 = int_to_ptr.hbm [resolvable:$true] %s235_s13  ;;  %s238_s15 = int_to_ptr.vmem [resolvable:$true] %s237_s15 }
  0x1e   : > { %p536_p10 = pnand %p545_p4, %p52_p9  ;;  %s225_s16 = scalar_lea.sflag [#allocation3], %s224_s6 }
  0x1f   : > { %246 = sbr.rel (%p877_p7) target bundleno = 444 (0x1bc), region = 40  ;;  %s918_s25 = sand.u32 (!%p877_p7), 1, %s769_s19  }
  0x20   : > { %538 = dma.hbm_to_vmem [thread:$0]  (!%p536_p10), %s236_s13, 128, %s238_s15, %s225_s16  }
  0x21   : > { %s497_s30 = sshll.u32 (!%p877_p7), %s918_s25, 3  ;;  %s249_s24 = scalar_lea.sflag (!%p877_p7), [#allocation3], %s918_s25 }
  0x22   : > { %s252_s10 = scalar_lea.vmem (!%p877_p7), [#allocation2], %s497_s30 }
  0x24   : > { %752 = dma.done.wait (%p864_p3), %s249_s24, 128  }
  0x25   : > { %754 = vsyncadd (%p864_p3), %s249_s24, 4294967168 }
  0x26   : > { %756 = dma.done.wait (%p858_p1), [#allocation6], 272  }
  0x27   : > { %758 = vsyncadd (%p858_p1), [#allocation6], 4294967024  ;;  %vm294_vm0 = vcmask 261120   ;;  %v291_v0 = vld [vmem:[%s252_s10] sm:$0xff]  ;;  %v791_v2 = vmov 32.0   ;;  %v514_v15 = vld [vmem:[#allocation7] sm:$0xff] }
  0x28   : > { %v295_v1 = vsel %vm294_vm0, %v291_v0, 0.0  ;;  %605 = vrcp.f32 %v791_v2  ;;  %v515_v14 = vld [vmem:[#allocation7 + $0x8] sm:$0xff]  ;;  %v602_v25 = vld [vmem:[#allocation5] ss:$0 sm:$0xff]  ;;  %s500_s7 = sshll.u32 %s918_s25, 2  ;;  %s511_s6 = sshll.u32 %s777_s21, 2 }
  0x29   : > { %296 = vadd.xlane.f32.xlu0 %v295_v1  ;;  %362 = vmatpush.bf16.msra.mxu0 %v515_v14  ;;  %v603_v28 = vld [vmem:[%s980_s2] ss:$0 sm:$0xff]  ;;  %s384_s14 = scalar_lea.hbm %s983_s5, %s511_s6  ;;  %s289_s15 = scalar_lea.vmem [#allocation8], %s500_s7  ;;  %vm370_vm5 = vcmask 781312  }
  0x2a   : > { %v604_v32 = vld [vmem:[%s982_s4] ss:$0 sm:$0xff]  ;;  %s386_s16 = sshll.u32 %s289_s15, 4  ;;  %s388_s30 = sshll.u32 %s384_s14, 4  ;;  %s387_s16 = int_to_ptr.vmem [resolvable:$true] %s386_s16  ;;  %s389_s30 = int_to_ptr.hbm [resolvable:$true] %s388_s30 }
  0x2b   : > { %s373_s21 = scalar_lea.sflag [#allocation4], %s918_s25  ;;  %s713_s24 = sshra.s32 %s389_s30, 4  ;;  %s714_s24 = int_to_ptr.hbm [resolvable:$true] %s713_s24 }
  0x2c   : > { %s715_s10 = scalar_lea.hbm %s714_s24, 4  ;;  %s719_s7 = scalar_lea.hbm %s983_s5, 8 }
  0x2d   : > { %363 = vmatpush.bf16.msra.mxu0 %v514_v15  ;;  %p716_p1 = scmp.ne.s32.totalorder %s714_s24, %s715_s10  ;;  %p720_p11 = scmp.lt.s32.totalorder %s714_s24, %s983_s5 }
  0x2e   : > { %v606_v3 = vpop.eup %605  ;;  %p721_p12 = scmp.lt.s32.totalorder %s719_s7, %s715_s10 }
  0x2f   : > { %v299_v4 = vmul.f32 32.0, %v606_v3  ;;  %vm303_vm1 = vweird.f32 %v606_v3  ;;  %p717_p3 = pnand %p716_p1, %p898_p2 }
  0x30   : > { %p722_p13 = por %p721_p12, %p720_p11 }
  0x31   : > { %v300_v5 = vsub.f32 1.0, %v299_v4  ;;  %p718_p7 = pneg %p717_p3 }
  0x33   : > { %v301_v6 = vmul.f32 %v606_v3, %v300_v5  ;;  %p723_p0 = pnand %p722_p13, %p718_p7 }
  0x35   : > { %v302_v7 = vadd.f32 %v606_v3, %v301_v6 }
  0x37   : > { %v304_v8 = vsel %vm303_vm1, %v606_v3, %v302_v7 }
  0x9c   : > { %v297_v9 = vpop.xlane.xlu0 %296 }
  0x9d   : > { %v305_v10 = vmul.f32 %v304_v8, %v297_v9 }
  0x9f   : > { %v306_v11 = vsub.f32 %v291_v0, %v305_v10 }
  0xa1   : > { %v307_v12 = vmul.f32 %v306_v11, %v306_v11 }
  0xa3   : > { %v308_v13 = vsel %vm294_vm0, %v307_v12, 0.0 }
  0xa4   : > { %309 = vadd.xlane.f32.xlu0 %v308_v13 }
 0x117   : > { %v310_v16 = vpop.xlane.xlu0 %309 }
 0x118   : > { %v311_v17 = vmul.f32 %v310_v16, %v304_v8 }
 0x11a   : > { %v312_v18 = vadd.f32 1e-05, %v311_v17 }
 0x11c   : > { %607 = vrsqrt.f32 %v312_v18  ;;  %vm319_vm3 = vweird.f32 %v312_v18 }
 0x122   : > { %v608_v19 = vpop.eup %607 }
 0x123   : > { %v314_v20 = vmul.f32 %v608_v19, %v312_v18  ;;  %vm320_vm2 = vweird.f32 %v608_v19 }
 0x124   : > { %vm321_vm4 = vmor %vm319_vm3, %vm320_vm2 }
 0x125   : > { %v315_v21 = vmul.f32 %v608_v19, %v314_v20 }
 0x127   : > { %v316_v22 = vmul.f32 0.5, %v315_v21 }
 0x129   : > { %v317_v23 = vsub.f32 1.5, %v316_v22 }
 0x12b   : > { %v318_v24 = vmul.f32 %v608_v19, %v317_v23 }
 0x12d   : > { %v322_v26 = vsel %vm321_vm4, %v608_v19, %v318_v24 }
 0x12e   : > { %v323_v27 = vmul.f32 %v322_v26, %v306_v11 }
 0x130   : > { %v327_v29 = vmul.f32 %v602_v25, %v323_v27 }
 0x132   : > { %v331_v30 = vadd.f32 %v603_v28, %v327_v29 }
 0x134   : > { %v332_v31 = vpack.c.bf16 %v331_v30, %v331_v30 }
 0x136   : > { %509 = vmatmul.msk.bf16.vlgmr.msra.gmra.mxu0 %vm294_vm0, %v332_v31 }
 0x1b3   : > { %v365_v33 = vpop.f32.mrf.mxu0 }
 0x1b4   : > { %v366_v34 = vadd.f32 %v604_v32, %v365_v33 }
 0x1b6   : > { %v369_v35 = vpack.c.bf16 %v366_v34, %v366_v34 }
 0x1b8   : > { %371 = vst.msk [vmem:[%s289_s15] sm:$0xf] %vm370_vm5, %v369_v35 }
 0x1b9   : > { %726 = shalt.err (!%p723_p0)
}
 0x1ba   : > { %526 = dma.vmem_to_hbm [thread:$0]  (%p898_p2), %s387_s16, 64, %s389_s30, %s373_s21  }
 0x1bb   : > { %v367_v36 = vpop.f32.mrf.mxu0 }
 0x1bc PF: > { %s400_s25 = sand.u32 1, %s765_s18   ;;  %p540_p4 = pnand %p493_p8, %p869_p5 }
 0x1bd   : > { %s401_s11 = scalar_lea.sflag [#allocation4], %s400_s25 }
 0x1be   : > { %p541_p6 = pneg %p540_p4 }
 0x1c0   : > { %760 = dma.done.wait (%p541_p6), %s401_s11, 64  }
 0x1c1   : > { %762 = vsyncadd (%p541_p6), %s401_s11, 4294967232  ;;  %s22_s23 = sadd.s32 1, %s785_s23   ;;  %s989_s18 = smov %s769_s19 }
 0x1c2   : > { %p19_p9 = scmp.ge.s32.totalorder %s22_s23, 4   ;;  %s990_s19 = smov %s773_s20 }
 0x1c3   : > { %s991_s20 = smov %s908_s9  ;;  %s992_s21 = smov %s781_s22 }
 0x1c4   : > { %s993_s22 = smov %s995_s17  ;;  %21 = sbr.rel (!%p19_p9) target bundleno = 7 (0x7), region = 93 }
 0x1c9   :  { %407 = vsyncpa [#allocation3], 1 }
 0x1ca   :  { %409 = vsyncpa [#allocation3 + $0x1], 1 }
 0x1cb   :  { %410 = vsyncpa [#allocation6], 1 }
 0x1cc   :  { %411 = vsyncpa [#allocation4], 1 }
 0x1cd   :  { %413 = vsyncpa [#allocation4 + $0x1], 1 }

</bundles_post_ra>
